<compile_context>
chip_gen: v7x
topology: tpu7x:2x2x1
jax: 0.10.0
libtpu: 0.0.40
codegen_flags: <defaults>
</compile_context>

<pallas_src>
import jax
import jax.numpy as jnp
from jax.experimental import pallas as pl
from jax.experimental.pallas import tpu as pltpu


def _round_up(x, m):
    return (x + m - 1) // m * m


# ---------------------------------------------------------------------------
# Pallas kernel: the adapter MLP (the compute hot path).
#   x:  (TM, DK)   bf16   (DK = K*D, K-major / D-minor ordering)
#   w1: (DK, Hp)   w2: (Hp, Hp)   w3: (Hp, Pp)   bf16  (already (in, out) and padded)
#   b1: (1, Hp)    b2: (1, Hp)    b3: (1, Pp)    f32
#   o:  (TM, Pp)   bf16
# Matmuls accumulate in f32 on the MXU; activations are cast back to bf16 between
# layers to match torch's bf16 nn.Linear semantics.  Padded columns carry zeros end
# to end (zero weights + zero bias + ReLU), so the wrapper can slice them off.
# ---------------------------------------------------------------------------
def adapter_kernel(x_ref, w1_ref, b1_ref, w2_ref, b2_ref, w3_ref, b3_ref, o_ref):
    x = x_ref[...]

    h1 = jnp.dot(x, w1_ref[...], preferred_element_type=jnp.float32) + b1_ref[...]
    h1 = jnp.maximum(h1, 0.0).astype(jnp.bfloat16)

    h2 = jnp.dot(h1, w2_ref[...], preferred_element_type=jnp.float32) + b2_ref[...]
    h2 = jnp.maximum(h2, 0.0).astype(jnp.bfloat16)

    h3 = jnp.dot(h2, w3_ref[...], preferred_element_type=jnp.float32) + b3_ref[...]
    o_ref[...] = h3.astype(o_ref.dtype)


def _make_adapter_call(M, DK, Hp, Pp, TM, single_buffer_weights, vmem_limit, cost):
    """Build the pallas_call for the adapter MLP."""
    if single_buffer_weights:
        # Constant index_map -> loaded once and revisited; one buffer is enough.
        resident_kw = dict(pipeline_mode=pl.Buffered(1))
    else:
        resident_kw = {}

    def resident(shape):
        return pl.BlockSpec(shape, lambda i: (0, 0), **resident_kw)

    grid = (pl.cdiv(M, TM),)
    return pl.pallas_call(
        adapter_kernel,
        out_shape=jax.ShapeDtypeStruct((M, Pp), jnp.bfloat16),
        grid_spec=pltpu.PrefetchScalarGridSpec(
            num_scalar_prefetch=0,
            grid=grid,
            in_specs=[
                pl.BlockSpec((TM, DK), lambda i: (i, 0)),  # activations: tiled, pipelined
                resident((DK, Hp)),                        # w1 (VMEM-resident)
                resident((1, Hp)),                         # b1 (f32)
                resident((Hp, Hp)),                        # w2
                resident((1, Hp)),                         # b2 (f32)
                resident((Hp, Pp)),                        # w3
                resident((1, Pp)),                         # b3 (f32)
            ],
            out_specs=pl.BlockSpec((TM, Pp), lambda i: (i, 0)),
        ),
        compiler_params=pltpu.CompilerParams(
            dimension_semantics=("parallel",),  # row tiles shard across TCs on v7x
            vmem_limit_bytes=vmem_limit,
        ),
        cost_estimate=cost,
    )


def adapter_pallas(x2d, params, tm=256):
    """x2d: (M, DK) bf16 -> (M, Pp) bf16 via the 3-layer adapter MLP (Pp lane-padded)."""
    M, DK = x2d.shape
    Hp = params["w1"].shape[1]
    Pp = params["w3"].shape[1]

    # Row tile: 256 for real workloads, shrunk (multiple of 16) for tiny demo inputs.
    TM = min(tm, _round_up(M, 16))

    flops = 2 * M * (DK * Hp + Hp * Hp + Hp * Pp)
    bytes_accessed = (
        M * DK * 2                                  # activations in (bf16)
        + (DK * Hp + Hp * Hp + Hp * Pp) * 2         # weights (bf16)
        + (Hp + Hp + Pp) * 4                        # biases (f32)
        + M * Pp * 2                                # output (bf16)
    )
    cost = pl.CostEstimate(flops=flops, transcendentals=0,
                           bytes_accessed=bytes_accessed)

    w_bytes = (DK * Hp + Hp * Hp + Hp * Pp) * 2 + (Hp + Hp + Pp) * 4
    act_bytes = 2 * TM * (DK + Pp) * 2              # double-buffered in/out row tiles

    args = (x2d, params["w1"], params["b1"], params["w2"], params["b2"],
            params["w3"], params["b3"])

    try:
        # Preferred: single-buffered resident weights (halves weight VMEM footprint).
        vmem_limit = int(min(max(w_bytes + act_bytes + (4 << 20), 32 << 20), 128 << 20))
        return _make_adapter_call(M, DK, Hp, Pp, TM, True, vmem_limit, cost)(*args)
    except Exception:
        # Fallback for jax builds where pipeline_mode=pl.Buffered(1) is unsupported.
        vmem_limit = int(min(max(2 * w_bytes + act_bytes + (4 << 20), 32 << 20), 128 << 20))
        return _make_adapter_call(M, DK, Hp, Pp, TM, False, vmem_limit, cost)(*args)


# ---------------------------------------------------------------------------
# Forward pass matching SpeechEncoder.forward semantics (post-backbone part).
# ---------------------------------------------------------------------------
def speech_encoder_forward(feats, attention_mask, params, downsample_K=5,
                           time_reduction_factor=320):
    """
    feats:          (B, T, D) bf16   -- stand-in for model(**input_dict).last_hidden_state
    attention_mask: (B, L)    int32  -- stand-in for processor's attention_mask
    returns (x, mask) with x: (B, T//K, project_dim) bf16, mask: (B, T//K)
    """
    B, T, D = feats.shape
    K = downsample_K
    Tout = T // K
    P = params["project_dim"]

    # torch: x.unfold(1, K, K).flatten(2) -> (B, Tout, D*K), D-major / K-minor.
    # We keep the natural K-major / D-minor reshape (no runtime transpose); the
    # D-major ordering was absorbed into w1's row permutation at init.
    x = feats[:, : Tout * K, :].reshape(B * Tout, K * D)

    out = adapter_pallas(x, params)                 # (B*Tout, Pp), lane-padded
    out = out[:, :P].reshape(B, Tout, P)            # slice off zero-padded columns

    # mask = attention_mask[:, ::time_reduction_factor * K][:, :Tout]
    mask = attention_mask[:, :: time_reduction_factor * K][:, :Tout]
    return out, mask


# ---------------------------------------------------------------------------
# Deterministic parameter init (shapes from the module's __init__):
#   adapter = Linear(D*K -> H), ReLU, Linear(H -> H), ReLU, Linear(H -> P), bf16
# Weights are stored already transposed to (in, out) for y = x @ W + b, with
#   * w1 rows permuted from torch's D-major/K-minor unfold order to the kernel's
#     K-major/D-minor order (one-time, free at runtime),
#   * H and P zero-padded up to lane-dense multiples of 128,
#   * biases kept in f32 (tiny; added directly to the f32 MXU accumulator).
# ---------------------------------------------------------------------------
def permute_w1_rows(w1_dmajor, D, K):
    # new_row[k*D + d] = old_row[d*K + k]
    idx = (jnp.arange(D)[None, :] * K + jnp.arange(K)[:, None]).reshape(-1)
    return w1_dmajor[idx]


def init_params(key, D, K, H, P, lane=128):
    DK = D * K
    Hp = _round_up(H, lane)
    Pp = _round_up(P, lane)
    k1, k2, k3 = jax.random.split(key, 3)

    def lin(k, fan_in, fan_out):
        bound = float(fan_in) ** -0.5
        w = jax.random.uniform(k, (fan_in, fan_out), jnp.float32, -bound, bound)
        b = jnp.zeros((fan_out,), jnp.float32)
        return w, b

    w1, b1 = lin(k1, DK, H)            # rows in torch's D-major/K-minor input order
    w1 = permute_w1_rows(w1, D, K)     # -> kernel's K-major/D-minor order
    w2, b2 = lin(k2, H, H)
    w3, b3 = lin(k3, H, P)

    def pad2(w, rows, cols):
        return jnp.pad(w, ((0, rows - w.shape[0]), (0, cols - w.shape[1])))

    return dict(
        w1=pad2(w1, DK, Hp).astype(jnp.bfloat16),
        b1=jnp.pad(b1, (0, Hp - H)).reshape(1, Hp).astype(jnp.float32),
        w2=pad2(w2, Hp, Hp).astype(jnp.bfloat16),
        b2=jnp.pad(b2, (0, Hp - H)).reshape(1, Hp).astype(jnp.float32),
        w3=pad2(w3, Hp, Pp).astype(jnp.bfloat16),
        b3=jnp.pad(b3, (0, Pp - P)).reshape(1, Pp).astype(jnp.float32),
        project_dim=P,
    )


if __name__ == "__main__":
    # Small, self-consistent shapes:
    B = 2            # batch
    D = 32           # model_output_dim (HuBERT hidden size, scaled down)
    K = 5            # downsample_K
    T = 40           # feature frames -> Tout = 8
    H = 64           # hidden_dim     (padded to 128 inside init_params)
    P = 16           # project_dim    (padded to 128 inside init_params)
    TRF = 320        # time_reduction_factor = 16000 / 50
    L = T * TRF      # raw-audio-length attention mask

    key = jax.random.PRNGKey(0)
    k_feat, k_param = jax.random.split(key)

    feats = jax.random.normal(k_feat, (B, T, D), jnp.float32).astype(jnp.bfloat16)

    # Synthetic per-example audio lengths -> attention mask (1 = valid, 0 = pad).
    lengths = jnp.array([L, L - 3 * TRF * K], dtype=jnp.int32)
    attention_mask = (jnp.arange(L)[None, :] < lengths[:, None]).astype(jnp.int32)

    params = init_params(k_param, D, K, H, P)

    out, mask = speech_encoder_forward(feats, attention_mask, params,
                                       downsample_K=K, time_reduction_factor=TRF)
    out = jax.block_until_ready(out)
    mask = jax.block_until_ready(mask)

    assert out.shape == (B, T // K, P) and out.dtype == jnp.bfloat16
    assert mask.shape == (B, T // K)
    print("KERNEL_OK")
</pallas_src>

<mosaic_0001>
module attributes {stable_mosaic.version = 11 : i64} {
  func.func @adapter_kernel(%arg0: i32, %arg1: memref<16x160xbf16, #tpu.memory_space<vmem>>, %arg2: memref<160x128xbf16, #tpu.memory_space<vmem>>, %arg3: memref<1x128xf32, #tpu.memory_space<vmem>>, %arg4: memref<128x128xbf16, #tpu.memory_space<vmem>>, %arg5: memref<1x128xf32, #tpu.memory_space<vmem>>, %arg6: memref<128x128xbf16, #tpu.memory_space<vmem>>, %arg7: memref<1x128xf32, #tpu.memory_space<vmem>>, %arg8: memref<16x128xbf16, #tpu.memory_space<vmem>>) attributes {dimension_semantics = [#tpu.dimension_semantics<parallel>], iteration_bounds = array<i64: 1>, scalar_prefetch = 0 : i64, scratch_operands = 0 : i64, tpu.core_type = #tpu.core_type<tc>, window_params = [{transform_indices = @transform_0, window_bounds = array<i64: 16, 160>}, {pipeline_mode = #tpu.pipeline_mode<synchronous>, transform_indices = @transform_1, window_bounds = array<i64: 160, 128>}, {pipeline_mode = #tpu.pipeline_mode<synchronous>, transform_indices = @transform_2, window_bounds = array<i64: 1, 128>}, {pipeline_mode = #tpu.pipeline_mode<synchronous>, transform_indices = @transform_3, window_bounds = array<i64: 128, 128>}, {pipeline_mode = #tpu.pipeline_mode<synchronous>, transform_indices = @transform_4, window_bounds = array<i64: 1, 128>}, {pipeline_mode = #tpu.pipeline_mode<synchronous>, transform_indices = @transform_5, window_bounds = array<i64: 128, 128>}, {pipeline_mode = #tpu.pipeline_mode<synchronous>, transform_indices = @transform_6, window_bounds = array<i64: 1, 128>}, {transform_indices = @transform_7, window_bounds = array<i64: 16, 128>}]} {
    %c0 = arith.constant 0 : index
    %c0_0 = arith.constant 0 : index
    %0 = vector.load %arg1[%c0, %c0_0] : memref<16x160xbf16, #tpu.memory_space<vmem>>, vector<16x160xbf16>
    %c0_1 = arith.constant 0 : index
    %c0_2 = arith.constant 0 : index
    %1 = vector.load %arg2[%c0_1, %c0_2] : memref<160x128xbf16, #tpu.memory_space<vmem>>, vector<160x128xbf16>
    %cst = arith.constant dense<0.000000e+00> : vector<16x128xf32>
    %2 = tpu.matmul %0, %1, %cst {dimension_numbers = #tpu.dot_dimension_numbers<[1], [0], [0], [1], [0, 0, 1, 1], [], []>} : vector<16x160xbf16>, vector<160x128xbf16>, vector<16x128xf32> -> vector<16x128xf32>
    %c0_3 = arith.constant 0 : index
    %c0_4 = arith.constant 0 : index
    %3 = vector.load %arg3[%c0_3, %c0_4] : memref<1x128xf32, #tpu.memory_space<vmem>>, vector<1x128xf32>
    %4 = vector.broadcast %3 : vector<1x128xf32> to vector<16x128xf32>
    %5 = arith.addf %2, %4 : vector<16x128xf32>
    %cst_5 = arith.constant 0.000000e+00 : f32
    %6 = vector.broadcast %cst_5 : f32 to vector<16x128xf32>
    %7 = arith.maximumf %5, %6 : vector<16x128xf32>
    %8 = arith.truncf %7 : vector<16x128xf32> to vector<16x128xbf16>
    %c0_6 = arith.constant 0 : index
    %c0_7 = arith.constant 0 : index
    %9 = vector.load %arg4[%c0_6, %c0_7] : memref<128x128xbf16, #tpu.memory_space<vmem>>, vector<128x128xbf16>
    %cst_8 = arith.constant dense<0.000000e+00> : vector<16x128xf32>
    %10 = tpu.matmul %8, %9, %cst_8 {dimension_numbers = #tpu.dot_dimension_numbers<[1], [0], [0], [1], [0, 0, 1, 1], [], []>} : vector<16x128xbf16>, vector<128x128xbf16>, vector<16x128xf32> -> vector<16x128xf32>
    %c0_9 = arith.constant 0 : index
    %c0_10 = arith.constant 0 : index
    %11 = vector.load %arg5[%c0_9, %c0_10] : memref<1x128xf32, #tpu.memory_space<vmem>>, vector<1x128xf32>
    %12 = vector.broadcast %11 : vector<1x128xf32> to vector<16x128xf32>
    %13 = arith.addf %10, %12 : vector<16x128xf32>
    %cst_11 = arith.constant 0.000000e+00 : f32
    %14 = vector.broadcast %cst_11 : f32 to vector<16x128xf32>
    %15 = arith.maximumf %13, %14 : vector<16x128xf32>
    %16 = arith.truncf %15 : vector<16x128xf32> to vector<16x128xbf16>
    %c0_12 = arith.constant 0 : index
    %c0_13 = arith.constant 0 : index
    %17 = vector.load %arg6[%c0_12, %c0_13] : memref<128x128xbf16, #tpu.memory_space<vmem>>, vector<128x128xbf16>
    %cst_14 = arith.constant dense<0.000000e+00> : vector<16x128xf32>
    %18 = tpu.matmul %16, %17, %cst_14 {dimension_numbers = #tpu.dot_dimension_numbers<[1], [0], [0], [1], [0, 0, 1, 1], [], []>} : vector<16x128xbf16>, vector<128x128xbf16>, vector<16x128xf32> -> vector<16x128xf32>
    %c0_15 = arith.constant 0 : index
    %c0_16 = arith.constant 0 : index
    %19 = vector.load %arg7[%c0_15, %c0_16] : memref<1x128xf32, #tpu.memory_space<vmem>>, vector<1x128xf32>
    %20 = vector.broadcast %19 : vector<1x128xf32> to vector<16x128xf32>
    %21 = arith.addf %18, %20 : vector<16x128xf32>
    %22 = arith.truncf %21 : vector<16x128xf32> to vector<16x128xbf16>
    %c0_17 = arith.constant 0 : index
    %c0_18 = arith.constant 0 : index
    %23 = vector.load %arg8[%c0_17, %c0_18] : memref<16x128xbf16, #tpu.memory_space<vmem>>, vector<16x128xbf16>
    tpu.vector_store %arg8[%c0_17, %c0_18], %22 {strides = array<i32>} : memref<16x128xbf16, #tpu.memory_space<vmem>>, vector<16x128xbf16>,
    return
  }
  func.func @transform_0(%arg0: i32) -> (i32, i32) {
    %c0_i32 = arith.constant 0 : i32
    %c0_i32_0 = arith.constant 0 : i32
    return %arg0, %c0_i32 : i32, i32
  }
  func.func @transform_1(%arg0: i32) -> (i32, i32) {
    %c0_i32 = arith.constant 0 : i32
    %c0_i32_0 = arith.constant 0 : i32
    %c0_i32_1 = arith.constant 0 : i32
    return %c0_i32, %c0_i32_0 : i32, i32
  }
  func.func @transform_2(%arg0: i32) -> (i32, i32) {
    %c0_i32 = arith.constant 0 : i32
    %c0_i32_0 = arith.constant 0 : i32
    %c0_i32_1 = arith.constant 0 : i32
    return %c0_i32, %c0_i32_0 : i32, i32
  }
  func.func @transform_3(%arg0: i32) -> (i32, i32) {
    %c0_i32 = arith.constant 0 : i32
    %c0_i32_0 = arith.constant 0 : i32
    %c0_i32_1 = arith.constant 0 : i32
    return %c0_i32, %c0_i32_0 : i32, i32
  }
  func.func @transform_4(%arg0: i32) -> (i32, i32) {
    %c0_i32 = arith.constant 0 : i32
    %c0_i32_0 = arith.constant 0 : i32
    %c0_i32_1 = arith.constant 0 : i32
    return %c0_i32, %c0_i32_0 : i32, i32
  }
  func.func @transform_5(%arg0: i32) -> (i32, i32) {
    %c0_i32 = arith.constant 0 : i32
    %c0_i32_0 = arith.constant 0 : i32
    %c0_i32_1 = arith.constant 0 : i32
    return %c0_i32, %c0_i32_0 : i32, i32
  }
  func.func @transform_6(%arg0: i32) -> (i32, i32) {
    %c0_i32 = arith.constant 0 : i32
    %c0_i32_0 = arith.constant 0 : i32
    %c0_i32_1 = arith.constant 0 : i32
    return %c0_i32, %c0_i32_0 : i32, i32
  }
  func.func @transform_7(%arg0: i32) -> (i32, i32) {
    %c0_i32 = arith.constant 0 : i32
    %c0_i32_0 = arith.constant 0 : i32
    return %arg0, %c0_i32 : i32, i32
  }
}

module attributes {stable_mosaic.version = 11 : i64} {
  func.func @adapter_kernel(%arg0: i32, %arg1: memref<16x160xbf16, #tpu.memory_space<vmem>>, %arg2: memref<160x128xbf16, #tpu.memory_space<vmem>>, %arg3: memref<1x128xf32, #tpu.memory_space<vmem>>, %arg4: memref<128x128xbf16, #tpu.memory_space<vmem>>, %arg5: memref<1x128xf32, #tpu.memory_space<vmem>>, %arg6: memref<128x128xbf16, #tpu.memory_space<vmem>>, %arg7: memref<1x128xf32, #tpu.memory_space<vmem>>, %arg8: memref<16x128xbf16, #tpu.memory_space<vmem>>) attributes {dimension_semantics = [#tpu.dimension_semantics<parallel>], iteration_bounds = array<i64: 1>, scalar_prefetch = 0 : i64, scratch_operands = 0 : i64, tpu.core_type = #tpu.core_type<tc>, window_params = [{transform_indices = @transform_0, window_bounds = array<i64: 16, 160>}, {pipeline_mode = #tpu.pipeline_mode<synchronous>, transform_indices = @transform_1, window_bounds = array<i64: 160, 128>}, {pipeline_mode = #tpu.pipeline_mode<synchronous>, transform_indices = @transform_2, window_bounds = array<i64: 1, 128>}, {pipeline_mode = #tpu.pipeline_mode<synchronous>, transform_indices = @transform_3, window_bounds = array<i64: 128, 128>}, {pipeline_mode = #tpu.pipeline_mode<synchronous>, transform_indices = @transform_4, window_bounds = array<i64: 1, 128>}, {pipeline_mode = #tpu.pipeline_mode<synchronous>, transform_indices = @transform_5, window_bounds = array<i64: 128, 128>}, {pipeline_mode = #tpu.pipeline_mode<synchronous>, transform_indices = @transform_6, window_bounds = array<i64: 1, 128>}, {transform_indices = @transform_7, window_bounds = array<i64: 16, 128>}]} {
    %c0 = arith.constant 0 : index
    %c0_0 = arith.constant 0 : index
    %0 = vector.load %arg1[%c0, %c0_0] : memref<16x160xbf16, #tpu.memory_space<vmem>>, vector<16x160xbf16>
    %c0_1 = arith.constant 0 : index
    %c0_2 = arith.constant 0 : index
    %1 = vector.load %arg2[%c0_1, %c0_2] : memref<160x128xbf16, #tpu.memory_space<vmem>>, vector<160x128xbf16>
    %cst = arith.constant dense<0.000000e+00> : vector<16x128xf32>
    %2 = tpu.matmul %0, %1, %cst {dimension_numbers = #tpu.dot_dimension_numbers<[1], [0], [0], [1], [0, 0, 1, 1], [], []>} : vector<16x160xbf16>, vector<160x128xbf16>, vector<16x128xf32> -> vector<16x128xf32>
    %c0_3 = arith.constant 0 : index
    %c0_4 = arith.constant 0 : index
    %3 = vector.load %arg3[%c0_3, %c0_4] : memref<1x128xf32, #tpu.memory_space<vmem>>, vector<1x128xf32>
    %4 = vector.broadcast %3 : vector<1x128xf32> to vector<16x128xf32>
    %5 = arith.addf %2, %4 : vector<16x128xf32>
    %cst_5 = arith.constant 0.000000e+00 : f32
    %6 = vector.broadcast %cst_5 : f32 to vector<16x128xf32>
    %7 = arith.maximumf %5, %6 : vector<16x128xf32>
    %8 = arith.truncf %7 : vector<16x128xf32> to vector<16x128xbf16>
    %c0_6 = arith.constant 0 : index
    %c0_7 = arith.constant 0 : index
    %9 = vector.load %arg4[%c0_6, %c0_7] : memref<128x128xbf16, #tpu.memory_space<vmem>>, vector<128x128xbf16>
    %cst_8 = arith.constant dense<0.000000e+00> : vector<16x128xf32>
    %10 = tpu.matmul %8, %9, %cst_8 {dimension_numbers = #tpu.dot_dimension_numbers<[1], [0], [0], [1], [0, 0, 1, 1], [], []>} : vector<16x128xbf16>, vector<128x128xbf16>, vector<16x128xf32> -> vector<16x128xf32>
    %c0_9 = arith.constant 0 : index
    %c0_10 = arith.constant 0 : index
    %11 = vector.load %arg5[%c0_9, %c0_10] : memref<1x128xf32, #tpu.memory_space<vmem>>, vector<1x128xf32>
    %12 = vector.broadcast %11 : vector<1x128xf32> to vector<16x128xf32>
    %13 = arith.addf %10, %12 : vector<16x128xf32>
    %cst_11 = arith.constant 0.000000e+00 : f32
    %14 = vector.broadcast %cst_11 : f32 to vector<16x128xf32>
    %15 = arith.maximumf %13, %14 : vector<16x128xf32>
    %16 = arith.truncf %15 : vector<16x128xf32> to vector<16x128xbf16>
    %c0_12 = arith.constant 0 : index
    %c0_13 = arith.constant 0 : index
    %17 = vector.load %arg6[%c0_12, %c0_13] : memref<128x128xbf16, #tpu.memory_space<vmem>>, vector<128x128xbf16>
    %cst_14 = arith.constant dense<0.000000e+00> : vector<16x128xf32>
    %18 = tpu.matmul %16, %17, %cst_14 {dimension_numbers = #tpu.dot_dimension_numbers<[1], [0], [0], [1], [0, 0, 1, 1], [], []>} : vector<16x128xbf16>, vector<128x128xbf16>, vector<16x128xf32> -> vector<16x128xf32>
    %c0_15 = arith.constant 0 : index
    %c0_16 = arith.constant 0 : index
    %19 = vector.load %arg7[%c0_15, %c0_16] : memref<1x128xf32, #tpu.memory_space<vmem>>, vector<1x128xf32>
    %20 = vector.broadcast %19 : vector<1x128xf32> to vector<16x128xf32>
    %21 = arith.addf %18, %20 : vector<16x128xf32>
    %22 = arith.truncf %21 : vector<16x128xf32> to vector<16x128xbf16>
    %c0_17 = arith.constant 0 : index
    %c0_18 = arith.constant 0 : index
    %23 = vector.load %arg8[%c0_17, %c0_18] : memref<16x128xbf16, #tpu.memory_space<vmem>>, vector<16x128xbf16>
    tpu.vector_store %arg8[%c0_17, %c0_18], %22 {strides = array<i32>} : memref<16x128xbf16, #tpu.memory_space<vmem>>, vector<16x128xbf16>,
    return
  }
  func.func @transform_0(%arg0: i32) -> (i32, i32) {
    %c0_i32 = arith.constant 0 : i32
    %c0_i32_0 = arith.constant 0 : i32
    return %arg0, %c0_i32 : i32, i32
  }
  func.func @transform_1(%arg0: i32) -> (i32, i32) {
    %c0_i32 = arith.constant 0 : i32
    %c0_i32_0 = arith.constant 0 : i32
    %c0_i32_1 = arith.constant 0 : i32
    return %c0_i32, %c0_i32_0 : i32, i32
  }
  func.func @transform_2(%arg0: i32) -> (i32, i32) {
    %c0_i32 = arith.constant 0 : i32
    %c0_i32_0 = arith.constant 0 : i32
    %c0_i32_1 = arith.constant 0 : i32
    return %c0_i32, %c0_i32_0 : i32, i32
  }
  func.func @transform_3(%arg0: i32) -> (i32, i32) {
    %c0_i32 = arith.constant 0 : i32
    %c0_i32_0 = arith.constant 0 : i32
    %c0_i32_1 = arith.constant 0 : i32
    return %c0_i32, %c0_i32_0 : i32, i32
  }
  func.func @transform_4(%arg0: i32) -> (i32, i32) {
    %c0_i32 = arith.constant 0 : i32
    %c0_i32_0 = arith.constant 0 : i32
    %c0_i32_1 = arith.constant 0 : i32
    return %c0_i32, %c0_i32_0 : i32, i32
  }
  func.func @transform_5(%arg0: i32) -> (i32, i32) {
    %c0_i32 = arith.constant 0 : i32
    %c0_i32_0 = arith.constant 0 : i32
    %c0_i32_1 = arith.constant 0 : i32
    return %c0_i32, %c0_i32_0 : i32, i32
  }
  func.func @transform_6(%arg0: i32) -> (i32, i32) {
    %c0_i32 = arith.constant 0 : i32
    %c0_i32_0 = arith.constant 0 : i32
    %c0_i32_1 = arith.constant 0 : i32
    return %c0_i32, %c0_i32_0 : i32, i32
  }
  func.func @transform_7(%arg0: i32) -> (i32, i32) {
    %c0_i32 = arith.constant 0 : i32
    %c0_i32_0 = arith.constant 0 : i32
    return %arg0, %c0_i32 : i32, i32
  }
}

</mosaic_0001>

<bundles_post_ra>
// kernel: tpu_custom_call.1
= control target key start
LH: loop header
LB: loop body
LE: loop exit
PB: predicated region body
PF: predicated region fallthrough
CT: control target
= control target key end

     0   :  { %12 = vsyncpa [#allocation3], 0  ;;  %s903_s0 = inlined_call_operand.hbm [shape: bf16[16,160], index: 0, kind: input, shape index: {}]   ;;  %s904_s1 = inlined_call_operand.hbm [shape: bf16[160,128], index: 1, kind: input, shape index: {}]   ;;  %s905_s2 = inlined_call_operand.vmem [shape: f32[1,128], index: 2, kind: input, shape index: {}]   ;;  %s906_s3 = inlined_call_operand.hbm [shape: bf16[128,128], index: 3, kind: input, shape index: {}]   ;;  %s907_s4 = inlined_call_operand.vmem [shape: f32[1,128], index: 4, kind: input, shape index: {}]   ;;  %s908_s5 = inlined_call_operand.hbm [shape: bf16[128,128], index: 5, kind: input, shape index: {}]   ;;  %s909_s6 = inlined_call_operand.vmem [shape: f32[1,128], index: 6, kind: input, shape index: {}]   ;;  %s910_s7 = inlined_call_operand.hbm [shape: bf16[16,128], index: 7, kind: output, shape index: {}]  }
   0x1   :  { %13 = vsyncpa [#allocation6], 0 }
   0x2   :  { %14 = vsyncpa [#allocation9], 0 }
   0x3   :  { %15 = vsyncpa [#allocation4], 0  ;;  %s743_s24 = smov [#allocation5]   ;;  %s625_s28 = scalar_lea.hbm %s904_s1, 1280 }
   0x4   :  { %s33_s25 = sshll.u32 %s743_s24, 4  ;;  %p626_p0 = scmp.ne.s32.totalorder %s904_s1, %s625_s28  ;;  %s34_s25 = int_to_ptr.vmem [resolvable:$true] %s33_s25 }
   0x5   :  { %p629_p1 = scmp.lt.u32.totalorder %s625_s28, %s904_s1 }
   0x7   :  { %p631_p2 = pnand %p629_p1, %p626_p0 }
   0x9   :  { %634 = shalt.err (!%p631_p2)
}
   0xa   :  { %s635_s10 = scalar_lea.vmem %s34_s25, 1280  ;;  %p640_p4 = scmp.lt.s32.totalorder %s34_s25, %s34_s25 }
   0xb   :  { %p636_p3 = scmp.ne.s32.totalorder %s34_s25, %s635_s10  ;;  %p641_p5 = scmp.lt.s32.totalorder %s635_s10, %s635_s10 }
   0xd   :  { %p642_p6 = por %p641_p5, %p640_p4 }
   0xf   :  { %p643_p7 = pnand %p642_p6, %p636_p3 }
  0x11   :  { %646 = shalt.err (!%p643_p7)
}
  0x12   :  { %s744_s11 = smov 64   ;;  %s745_s12 = smov 4  }
  0x13   :  { %39 = dma.hbm_to_vmem [thread:$0]  %s904_s1, 1280, %s34_s25, [#allocation6], %s744_s11, %s744_s11, %s745_s12  }
  0x14   :  { %s746_s15 = smov [#allocation2]   ;;  %s647_s19 = scalar_lea.hbm %s903_s0, 256 }
  0x15   :  { %s21_s16 = sshll.u32 %s746_s15, 4  ;;  %p648_p8 = scmp.ne.s32.totalorder %s903_s0, %s647_s19  ;;  %s22_s16 = int_to_ptr.vmem [resolvable:$true] %s21_s16 }
  0x16   :  { %p651_p9 = scmp.lt.u32.totalorder %s647_s19, %s903_s0 }
  0x18   :  { %p653_p10 = pnand %p651_p9, %p648_p8 }
  0x1a   :  { %656 = shalt.err (!%p653_p10)
}
  0x1b   :  { %s657_s24 = scalar_lea.vmem %s22_s16, 256  ;;  %p662_p12 = scmp.lt.s32.totalorder %s22_s16, %s22_s16 }
  0x1c   :  { %p658_p11 = scmp.ne.s32.totalorder %s22_s16, %s657_s24  ;;  %p663_p13 = scmp.lt.s32.totalorder %s657_s24, %s657_s24 }
  0x1e   :  { %p664_p0 = por %p663_p13, %p662_p12 }
  0x20   :  { %p665_p1 = pnand %p664_p0, %p658_p11 }
  0x22   :  { %668 = shalt.err (!%p665_p1)
}
  0x23   :  { %s747_s1 = smov 128   ;;  %s748_s25 = smov 8  }
  0x24   :  { %27 = dma.hbm_to_vmem [thread:$0]  %s903_s0, 256, %s22_s16, [#allocation3], %s747_s1, %s747_s1, %s748_s25  }
  0x25   :  { %s749_s28 = smov [#allocation7]   ;;  %s750_s30 = smov [#allocation8]  }
  0x26   :  { %s47_s29 = sshll.u32 %s749_s28, 4  ;;  %s61_s8 = sshll.u32 %s750_s30, 4  ;;  %s48_s29 = int_to_ptr.vmem [resolvable:$true] %s47_s29  ;;  %s822_s8 = int_to_ptr.vmem [resolvable:$true] %s61_s8 }
  0x27   :  { %s669_s13 = scalar_lea.hbm %s906_s3, 1024 }
  0x28   :  { %p670_p2 = scmp.ne.s32.totalorder %s906_s3, %s669_s13  ;;  %p673_p3 = scmp.lt.u32.totalorder %s669_s13, %s906_s3 }
  0x2a   :  { %p675_p4 = pnand %p673_p3, %p670_p2 }
  0x2c   :  { %678 = shalt.err (!%p675_p4)
}
  0x2d   :  { %s679_s0 = scalar_lea.vmem %s48_s29, 1024  ;;  %p684_p6 = scmp.lt.s32.totalorder %s48_s29, %s48_s29 }
  0x2e   :  { %p680_p5 = scmp.ne.s32.totalorder %s48_s29, %s679_s0  ;;  %p685_p7 = scmp.lt.s32.totalorder %s679_s0, %s679_s0 }
  0x30   :  { %p686_p8 = por %p685_p7, %p684_p6 }
  0x32   :  { %p687_p9 = pnand %p686_p8, %p680_p5 }
  0x34   :  { %690 = shalt.err (!%p687_p9)
}
  0x35   :  { %53 = dma.hbm_to_vmem [thread:$0]  %s906_s3, 1024, %s48_s29, [#allocation6], %s744_s11, %s744_s11, %s745_s12  }
  0x36   :  { %s691_s22 = scalar_lea.hbm %s908_s5, 1024 }
  0x37   :  { %p692_p10 = scmp.ne.s32.totalorder %s908_s5, %s691_s22  ;;  %p695_p11 = scmp.lt.u32.totalorder %s691_s22, %s908_s5 }
  0x39   :  { %p697_p12 = pnand %p695_p11, %p692_p10 }
  0x3b   :  { %700 = shalt.err (!%p697_p12)
}
  0x3c   :  { %s701_s26 = scalar_lea.vmem %s822_s8, 1024  ;;  %p706_p0 = scmp.lt.s32.totalorder %s822_s8, %s822_s8 }
  0x3d   :  { %p702_p13 = scmp.ne.s32.totalorder %s822_s8, %s701_s26  ;;  %p707_p1 = scmp.lt.s32.totalorder %s701_s26, %s701_s26 }
  0x3f   :  { %p708_p2 = por %p707_p1, %p706_p0 }
  0x41   :  { %p709_p3 = pnand %p708_p2, %p702_p13 }
  0x43   :  { %712 = shalt.err (!%p709_p3)
}
  0x44   :  { %67 = dma.hbm_to_vmem [thread:$0]  %s908_s5, 1024, %s822_s8, [#allocation9], %s744_s11, %s744_s11, %s745_s12  }
  0x45   :  { %735 = dma.done.wait [#allocation3], 256  }
  0x46   :  { %736 = vsyncadd [#allocation3], 4294967040 }
  0x47   :  { %737 = dma.done.wait [#allocation6], 2304  }
  0x48   :  { %738 = vsyncadd [#allocation6], 4294964992 }
  0x49   :  { %739 = dma.done.wait [#allocation9], 1024  }
  0x4a   :  { %740 = vsyncadd [#allocation9], 4294966272  ;;  %v751_v0 = vmov 0   ;;  %v752_v1 = vmov 0.0   ;;  %v596_v2 = vld [vmem:[#allocation5] sm:$0xff]   ;;  %v597_v3 = vld [vmem:[#allocation5 + $0x8] sm:$0xff]  }
  0x4b   :  { %185 = vmatprep.subr.bf16.mxu0 %v751_v0  ;;  %544 = vmatprep.subr.bf16.mxu1 %v752_v1  ;;  %v598_v4 = vld [vmem:[#allocation5 + $0x10] sm:$0xff]   ;;  %v599_v5 = vld [vmem:[#allocation5 + $0x18] sm:$0xff]   ;;  %vm181_vm0 = vcmask 261120   ;;  %v600_v8 = vld [vmem:[#allocation5 + $0x20] sm:$0xff]   ;;  %vm753_vm1 = vmmov 0   ;;  %s754_s9 = smov [#allocation10]  }
  0x4c   :  { %186 = vmatpush1.bf16.msra.mxu0 %v596_v2  ;;  %v608_v6 = vld [vmem:[#allocation2 + $0x4] ss:$8 sps:$4 sm:$0xff]   ;;  %v601_v10 = vld [vmem:[#allocation5 + $0x28] sm:$0xff]   ;;  %v611_v11 = vld [vmem:[#allocation7 + $0x10] sm:$0xff]   ;;  %560 = vmatprep.mubr.msk.bf16.mxu1 %vm753_vm1, %v752_v1  ;;  %s471_s10 = sshll.u32 %s754_s9, 4  ;;  %s472_s10 = int_to_ptr.vmem [resolvable:$true] %s471_s10 }
  0x4d   :  { %187 = vmatprep.subr.bf16.mxu0 %v751_v0  ;;  %v609_v7 = vld [vmem:[#allocation7] sm:$0xff]   ;;  %498 = vmatprep.mubr.msk.bf16.mxu0 %vm181_vm0, %v608_v6  ;;  %v610_v9 = vld [vmem:[#allocation7 + $0x8] sm:$0xff]   ;;  %v612_v13 = vld [vmem:[#allocation7 + $0x18] sm:$0xff]   ;;  %p718_p5 = scmp.lt.s32.totalorder %s472_s10, %s472_s10 }
  0x4e   :  { %545 = vmatpush3.bf16.msra.mxu1 %v609_v7  ;;  %v602_v12 = vld [vmem:[#allocation5 + $0x30] sm:$0xff]   ;;  %v603_v14 = vld [vmem:[#allocation5 + $0x38] sm:$0xff]   ;;  %v604_v16 = vld [vmem:[#allocation5 + $0x40] sm:$0xff]  }
  0x4f   :  { %546 = vmatprep.subr.bf16.mxu1 %v752_v1  ;;  %v613_v15 = vld [vmem:[#allocation7 + $0x20] sm:$0xff]   ;;  %v614_v17 = vld [vmem:[#allocation7 + $0x28] sm:$0xff]   ;;  %v605_v18 = vld [vmem:[#allocation5 + $0x48] sm:$0xff]  }
  0x50   :  { %188 = vmatpush1.bf16.msra.mxu0 %v597_v3  ;;  %v606_v19 = vld [vmem:[#allocation2] ss:$8 sps:$4 sm:$0xff]   ;;  %v615_v20 = vld [vmem:[#allocation7 + $0x30] sm:$0xff]   ;;  %v616_v21 = vld [vmem:[#allocation7 + $0x38] sm:$0xff]  }
  0x51   :  { %189 = vmatprep.subr.bf16.mxu0 %v751_v0  ;;  %v485_v22 = vld [vmem:[%s905_s2] ss:$0 sm:$0xff]  ;;  %v618_v33 = vld [vmem:[#allocation8 + $0x8] sm:$0xff]   ;;  %v619_v34 = vld [vmem:[#allocation8 + $0x10] sm:$0xff]  }
  0x52   :  { %547 = vmatpush3.bf16.msra.mxu1 %v610_v9  ;;  %v617_v31 = vld [vmem:[#allocation8] sm:$0xff]   ;;  %v620_v35 = vld [vmem:[#allocation8 + $0x18] sm:$0xff]   ;;  %v622_v37 = vld [vmem:[#allocation8 + $0x28] sm:$0xff]  }
  0x53   :  { %548 = vmatprep.subr.bf16.mxu1 %v752_v1  ;;  %v621_v36 = vld [vmem:[#allocation8 + $0x20] sm:$0xff]   ;;  %v623_v38 = vld [vmem:[#allocation8 + $0x30] sm:$0xff]   ;;  %v624_v39 = vld [vmem:[#allocation8 + $0x38] sm:$0xff]  }
  0x54   :  { %190 = vmatpush1.bf16.msra.mxu0 %v598_v4  ;;  %v499_v40 = vld [vmem:[%s907_s4] ss:$0 sm:$0xff]  ;;  %s713_s4 = scalar_lea.vmem %s472_s10, 128 }
  0x55   :  { %191 = vmatprep.subr.bf16.mxu0 %v751_v0  ;;  %v508_v50 = vld [vmem:[%s909_s6] ss:$0 sm:$0xff]  ;;  %p714_p4 = scmp.ne.s32.totalorder %s472_s10, %s713_s4  ;;  %p719_p6 = scmp.lt.s32.totalorder %s713_s4, %s713_s4 }
  0x56   :  { %549 = vmatpush3.bf16.msra.mxu1 %v611_v11 }
  0x57   :  { %550 = vmatprep.subr.bf16.mxu1 %v752_v1  ;;  %p720_p7 = por %p719_p6, %p718_p5 }
  0x58   :  { %192 = vmatpush1.bf16.msra.mxu0 %v599_v5 }
  0x59   :  { %193 = vmatprep.subr.bf16.mxu0 %v751_v0  ;;  %p721_p8 = pnand %p720_p7, %p714_p4 }
  0x5a   :  { %551 = vmatpush3.bf16.msra.mxu1 %v612_v13 }
  0x5b   :  { %552 = vmatprep.subr.bf16.mxu1 %v752_v1 }
  0x5c   :  { %194 = vmatpush1.bf16.msra.mxu0 %v600_v8 }
  0x5d   :  { %195 = vmatprep.subr.bf16.mxu0 %v751_v0 }
  0x5e   :  { %553 = vmatpush3.bf16.msra.mxu1 %v613_v15 }
  0x5f   :  { %554 = vmatprep.subr.bf16.mxu1 %v752_v1 }
  0x60   :  { %196 = vmatpush1.bf16.msra.mxu0 %v601_v10 }
  0x61   :  { %197 = vmatprep.subr.bf16.mxu0 %v751_v0 }
  0x62   :  { %555 = vmatpush3.bf16.msra.mxu1 %v614_v17 }
  0x63   :  { %556 = vmatprep.subr.bf16.mxu1 %v752_v1 }
  0x64   :  { %198 = vmatpush1.bf16.msra.mxu0 %v602_v12 }
  0x65   :  { %199 = vmatprep.subr.bf16.mxu0 %v751_v0 }
  0x66   :  { %557 = vmatpush3.bf16.msra.mxu1 %v615_v20 }
  0x67   :  { %558 = vmatprep.subr.bf16.mxu1 %v752_v1 }
  0x68   :  { %200 = vmatpush1.bf16.msra.mxu0 %v603_v14 }
  0x69   :  { %201 = vmatprep.subr.bf16.mxu0 %v751_v0 }
  0x6a   :  { %559 = vmatpush3.bf16.msra.mxu1 %v616_v21 }
  0x6b   :  { %564 = vmatprep.subr.bf16.mxu1 %v752_v1 }
  0x6c   :  { %202 = vmatpush1.bf16.msra.mxu0 %v604_v16 }
  0x6d   :  { %203 = vmatprep.subr.bf16.mxu0 %v751_v0 }
  0x70   :  { %204 = vmatpush1.bf16.msra.mxu0 %v605_v18 }
  0x73   :  { %218 = vmatmul.mubr.bf16.vlgmr.msra.gmra.mrb[0].mxu0 %v606_v19 }
 0x146   :  { %v219_v23 = vpop.f32.mrb[0].mxu0 }
 0x147   :  { %v220_v24 = vadd.f32 %v485_v22, %v219_v23  ;;  %v221_v25 = vpop.f32.mrb[1].mxu0 }
 0x148   :  { %v222_v26 = vpop.f32.mrb[2].mxu0 }
 0x149   :  { %v223_v27 = vadd.f32 %v485_v22, %v222_v26  ;;  %v224_v28 = vpop.f32.mrb[3].mxu0  ;;  %v226_v29 = vmax.f32 %v220_v24, 0.0 }
 0x14b   :  { %v227_v30 = vmax.f32 %v223_v27, 0.0 }
 0x14d   :  { %v228_v32 = vpack.c.bf16 %v227_v30, %v226_v29 }
 0x14f   :  { %561 = vmatmul.mubr.bf16.vlgmr.msra.gmra.mrb[0].mxu1 %v228_v32 }
 0x150   :  { %565 = vmatpush3.bf16.msra.mxu1 %v617_v31  ;;  %580 = vmatprep.mubr.msk.bf16.mxu1 %vm753_vm1, %v752_v1 }
 0x151   :  { %566 = vmatprep.subr.bf16.mxu1 %v752_v1 }
 0x154   :  { %567 = vmatpush3.bf16.msra.mxu1 %v618_v33 }
 0x155   :  { %568 = vmatprep.subr.bf16.mxu1 %v752_v1 }
 0x158   :  { %569 = vmatpush3.bf16.msra.mxu1 %v619_v34 }
 0x159   :  { %570 = vmatprep.subr.bf16.mxu1 %v752_v1 }
 0x15c   :  { %571 = vmatpush3.bf16.msra.mxu1 %v620_v35 }
 0x15d   :  { %572 = vmatprep.subr.bf16.mxu1 %v752_v1 }
 0x160   :  { %573 = vmatpush3.bf16.msra.mxu1 %v621_v36 }
 0x161   :  { %574 = vmatprep.subr.bf16.mxu1 %v752_v1 }
 0x164   :  { %575 = vmatpush3.bf16.msra.mxu1 %v622_v37 }
 0x165   :  { %576 = vmatprep.subr.bf16.mxu1 %v752_v1 }
 0x168   :  { %577 = vmatpush3.bf16.msra.mxu1 %v623_v38 }
 0x169   :  { %578 = vmatprep.subr.bf16.mxu1 %v752_v1 }
 0x16c   :  { %579 = vmatpush3.bf16.msra.mxu1 %v624_v39 }
 0x222   :  { %v334_v41 = vpop.f32.mrb[0].mxu1 }
 0x223   :  { %v335_v42 = vadd.f32 %v499_v40, %v334_v41  ;;  %v562_v43 = vpop.f32.mrb[1].mxu1 }
 0x224   :  { %v337_v44 = vpop.f32.mrb[2].mxu1 }
 0x225   :  { %v338_v45 = vadd.f32 %v499_v40, %v337_v44  ;;  %v563_v46 = vpop.f32.mrb[3].mxu1  ;;  %v341_v47 = vmax.f32 %v335_v42, 0.0 }
 0x227   :  { %v342_v48 = vmax.f32 %v338_v45, 0.0 }
 0x229   :  { %v343_v49 = vpack.c.bf16 %v342_v48, %v341_v47 }
 0x22b   :  { %581 = vmatmul.mubr.bf16.vlgmr.msra.gmra.mrb[4].mxu1 %v343_v49 }
 0x2fe   :  { %v449_v51 = vpop.f32.mrb[4].mxu1 }
 0x2ff   :  { %v582_v52 = vpop.f32.mrb[5].mxu1  ;;  %v450_v54 = vadd.f32 %v508_v50, %v449_v51 }
 0x300   :  { %v452_v53 = vpop.f32.mrb[6].mxu1 }
 0x301   :  { %v453_v55 = vadd.f32 %v508_v50, %v452_v53  ;;  %v583_v56 = vpop.f32.mrb[7].mxu1 }
 0x303   :  { %v524_v57 = vpack.c.bf16 %v453_v55, %v450_v54 }
 0x305   :  { %525 = vst [vmem:[#allocation10] sm:$0xff] %v524_v57  }
 0x306   :  { %724 = shalt.err (!%p721_p8)
}
 0x307   :  { %s725_s14 = scalar_lea.hbm %s910_s7, 128 }
 0x308   :  { %p726_p9 = scmp.ne.s32.totalorder %s910_s7, %s725_s14  ;;  %p729_p10 = scmp.lt.u32.totalorder %s725_s14, %s910_s7 }
 0x30a   :  { %p731_p11 = pnand %p729_p10, %p726_p9 }
 0x30c   :  { %734 = shalt.err (!%p731_p11)
}
 0x30d   :  { %477 = dma.vmem_to_hbm [thread:$0]  %s472_s10, 128, %s910_s7, [#allocation4], %s744_s11, %s744_s11, %s745_s12  }
 0x30e   :  { %741 = dma.done.wait [#allocation4], 128  }
 0x30f   :  { %742 = vsyncadd [#allocation4], 4294967168 }
 0x310   :  { %481 = vsyncpa [#allocation3], 1 }
 0x311   :  { %482 = vsyncpa [#allocation6], 1 }
 0x312   :  { %483 = vsyncpa [#allocation9], 1 }
 0x313   :  { %484 = vsyncpa [#allocation4], 1 }

// kernel: tpu_custom_call.1
= control target key start
LH: loop header
LB: loop body
LE: loop exit
PB: predicated region body
PF: predicated region fallthrough
CT: control target
= control target key end

     0   :  { %12 = vsyncpa [#allocation3], 0  ;;  %s903_s0 = inlined_call_operand.hbm [shape: bf16[16,160], index: 0, kind: input, shape index: {}]   ;;  %s904_s1 = inlined_call_operand.hbm [shape: bf16[160,128], index: 1, kind: input, shape index: {}]   ;;  %s905_s2 = inlined_call_operand.vmem [shape: f32[1,128], index: 2, kind: input, shape index: {}]   ;;  %s906_s3 = inlined_call_operand.hbm [shape: bf16[128,128], index: 3, kind: input, shape index: {}]   ;;  %s907_s4 = inlined_call_operand.vmem [shape: f32[1,128], index: 4, kind: input, shape index: {}]   ;;  %s908_s5 = inlined_call_operand.hbm [shape: bf16[128,128], index: 5, kind: input, shape index: {}]   ;;  %s909_s6 = inlined_call_operand.vmem [shape: f32[1,128], index: 6, kind: input, shape index: {}]   ;;  %s910_s7 = inlined_call_operand.hbm [shape: bf16[16,128], index: 7, kind: output, shape index: {}]  }
   0x1   :  { %13 = vsyncpa [#allocation6], 0 }
   0x2   :  { %14 = vsyncpa [#allocation9], 0 }
   0x3   :  { %15 = vsyncpa [#allocation4], 0  ;;  %s743_s24 = smov [#allocation5]   ;;  %s625_s28 = scalar_lea.hbm %s904_s1, 1280 }
   0x4   :  { %s33_s25 = sshll.u32 %s743_s24, 4  ;;  %p626_p0 = scmp.ne.s32.totalorder %s904_s1, %s625_s28  ;;  %s34_s25 = int_to_ptr.vmem [resolvable:$true] %s33_s25 }
   0x5   :  { %p629_p1 = scmp.lt.u32.totalorder %s625_s28, %s904_s1 }
   0x7   :  { %p631_p2 = pnand %p629_p1, %p626_p0 }
   0x9   :  { %634 = shalt.err (!%p631_p2)
}
   0xa   :  { %s635_s10 = scalar_lea.vmem %s34_s25, 1280  ;;  %p640_p4 = scmp.lt.s32.totalorder %s34_s25, %s34_s25 }
   0xb   :  { %p636_p3 = scmp.ne.s32.totalorder %s34_s25, %s635_s10  ;;  %p641_p5 = scmp.lt.s32.totalorder %s635_s10, %s635_s10 }
   0xd   :  { %p642_p6 = por %p641_p5, %p640_p4 }
   0xf   :  { %p643_p7 = pnand %p642_p6, %p636_p3 }
  0x11   :  { %646 = shalt.err (!%p643_p7)
}
  0x12   :  { %s744_s11 = smov 64   ;;  %s745_s12 = smov 4  }
  0x13   :  { %39 = dma.hbm_to_vmem [thread:$0]  %s904_s1, 1280, %s34_s25, [#allocation6], %s744_s11, %s744_s11, %s745_s12  }
  0x14   :  { %s746_s15 = smov [#allocation2]   ;;  %s647_s19 = scalar_lea.hbm %s903_s0, 256 }
  0x15   :  { %s21_s16 = sshll.u32 %s746_s15, 4  ;;  %p648_p8 = scmp.ne.s32.totalorder %s903_s0, %s647_s19  ;;  %s22_s16 = int_to_ptr.vmem [resolvable:$true] %s21_s16 }
  0x16   :  { %p651_p9 = scmp.lt.u32.totalorder %s647_s19, %s903_s0 }
  0x18   :  { %p653_p10 = pnand %p651_p9, %p648_p8 }
  0x1a   :  { %656 = shalt.err (!%p653_p10)
}
  0x1b   :  { %s657_s24 = scalar_lea.vmem %s22_s16, 256  ;;  %p662_p12 = scmp.lt.s32.totalorder %s22_s16, %s22_s16 }
  0x1c   :  { %p658_p11 = scmp.ne.s32.totalorder %s22_s16, %s657_s24  ;;  %p663_p13 = scmp.lt.s32.totalorder %s657_s24, %s657_s24 }
  0x1e   :  { %p664_p0 = por %p663_p13, %p662_p12 }
  0x20   :  { %p665_p1 = pnand %p664_p0, %p658_p11 }
  0x22   :  { %668 = shalt.err (!%p665_p1)
}
  0x23   :  { %s747_s1 = smov 128   ;;  %s748_s25 = smov 8  }
  0x24   :  { %27 = dma.hbm_to_vmem [thread:$0]  %s903_s0, 256, %s22_s16, [#allocation3], %s747_s1, %s747_s1, %s748_s25  }
  0x25   :  { %s749_s28 = smov [#allocation7]   ;;  %s750_s30 = smov [#allocation8]  }
  0x26   :  { %s47_s29 = sshll.u32 %s749_s28, 4  ;;  %s61_s8 = sshll.u32 %s750_s30, 4  ;;  %s48_s29 = int_to_ptr.vmem [resolvable:$true] %s47_s29  ;;  %s822_s8 = int_to_ptr.vmem [resolvable:$true] %s61_s8 }
  0x27   :  { %s669_s13 = scalar_lea.hbm %s906_s3, 1024 }
  0x28   :  { %p670_p2 = scmp.ne.s32.totalorder %s906_s3, %s669_s13  ;;  %p673_p3 = scmp.lt.u32.totalorder %s669_s13, %s906_s3 }
  0x2a   :  { %p675_p4 = pnand %p673_p3, %p670_p2 }
  0x2c   :  { %678 = shalt.err (!%p675_p4)
}
  0x2d   :  { %s679_s0 = scalar_lea.vmem %s48_s29, 1024  ;;  %p684_p6 = scmp.lt.s32.totalorder %s48_s29, %s48_s29 }
  0x2e   :  { %p680_p5 = scmp.ne.s32.totalorder %s48_s29, %s679_s0  ;;  %p685_p7 = scmp.lt.s32.totalorder %s679_s0, %s679_s0 }
  0x30   :  { %p686_p8 = por %p685_p7, %p684_p6 }
  0x32   :  { %p687_p9 = pnand %p686_p8, %p680_p5 }
  0x34   :  { %690 = shalt.err (!%p687_p9)
}
  0x35   :  { %53 = dma.hbm_to_vmem [thread:$0]  %s906_s3, 1024, %s48_s29, [#allocation6], %s744_s11, %s744_s11, %s745_s12  }
  0x36   :  { %s691_s22 = scalar_lea.hbm %s908_s5, 1024 }
  0x37   :  { %p692_p10 = scmp.ne.s32.totalorder %s908_s5, %s691_s22  ;;  %p695_p11 = scmp.lt.u32.totalorder %s691_s22, %s908_s5 }
  0x39   :  { %p697_p12 = pnand %p695_p11, %p692_p10 }
  0x3b   :  { %700 = shalt.err (!%p697_p12)
}
  0x3c   :  { %s701_s26 = scalar_lea.vmem %s822_s8, 1024  ;;  %p706_p0 = scmp.lt.s32.totalorder %s822_s8, %s822_s8 }
  0x3d   :  { %p702_p13 = scmp.ne.s32.totalorder %s822_s8, %s701_s26  ;;  %p707_p1 = scmp.lt.s32.totalorder %s701_s26, %s701_s26 }
  0x3f   :  { %p708_p2 = por %p707_p1, %p706_p0 }
  0x41   :  { %p709_p3 = pnand %p708_p2, %p702_p13 }
  0x43   :  { %712 = shalt.err (!%p709_p3)
}
  0x44   :  { %67 = dma.hbm_to_vmem [thread:$0]  %s908_s5, 1024, %s822_s8, [#allocation9], %s744_s11, %s744_s11, %s745_s12  }
  0x45   :  { %735 = dma.done.wait [#allocation3], 256  }
  0x46   :  { %736 = vsyncadd [#allocation3], 4294967040 }
  0x47   :  { %737 = dma.done.wait [#allocation6], 2304  }
  0x48   :  { %738 = vsyncadd [#allocation6], 4294964992 }
  0x49   :  { %739 = dma.done.wait [#allocation9], 1024  }
  0x4a   :  { %740 = vsyncadd [#allocation9], 4294966272  ;;  %v751_v0 = vmov 0   ;;  %v752_v1 = vmov 0.0   ;;  %v596_v2 = vld [vmem:[#allocation5] sm:$0xff]   ;;  %v597_v3 = vld [vmem:[#allocation5 + $0x8] sm:$0xff]  }
  0x4b   :  { %185 = vmatprep.subr.bf16.mxu0 %v751_v0  ;;  %544 = vmatprep.subr.bf16.mxu1 %v752_v1  ;;  %v598_v4 = vld [vmem:[#allocation5 + $0x10] sm:$0xff]   ;;  %v599_v5 = vld [vmem:[#allocation5 + $0x18] sm:$0xff]   ;;  %vm181_vm0 = vcmask 261120   ;;  %v600_v8 = vld [vmem:[#allocation5 + $0x20] sm:$0xff]   ;;  %vm753_vm1 = vmmov 0   ;;  %s754_s9 = smov [#allocation10]  }
  0x4c   :  { %186 = vmatpush1.bf16.msra.mxu0 %v596_v2  ;;  %v608_v6 = vld [vmem:[#allocation2 + $0x4] ss:$8 sps:$4 sm:$0xff]   ;;  %v601_v10 = vld [vmem:[#allocation5 + $0x28] sm:$0xff]   ;;  %v611_v11 = vld [vmem:[#allocation7 + $0x10] sm:$0xff]   ;;  %560 = vmatprep.mubr.msk.bf16.mxu1 %vm753_vm1, %v752_v1  ;;  %s471_s10 = sshll.u32 %s754_s9, 4  ;;  %s472_s10 = int_to_ptr.vmem [resolvable:$true] %s471_s10 }
  0x4d   :  { %187 = vmatprep.subr.bf16.mxu0 %v751_v0  ;;  %v609_v7 = vld [vmem:[#allocation7] sm:$0xff]   ;;  %498 = vmatprep.mubr.msk.bf16.mxu0 %vm181_vm0, %v608_v6  ;;  %v610_v9 = vld [vmem:[#allocation7 + $0x8] sm:$0xff]   ;;  %v612_v13 = vld [vmem:[#allocation7 + $0x18] sm:$0xff]   ;;  %p718_p5 = scmp.lt.s32.totalorder %s472_s10, %s472_s10 }
  0x4e   :  { %545 = vmatpush3.bf16.msra.mxu1 %v609_v7  ;;  %v602_v12 = vld [vmem:[#allocation5 + $0x30] sm:$0xff]   ;;  %v603_v14 = vld [vmem:[#allocation5 + $0x38] sm:$0xff]   ;;  %v604_v16 = vld [vmem:[#allocation5 + $0x40] sm:$0xff]  }
  0x4f   :  { %546 = vmatprep.subr.bf16.mxu1 %v752_v1  ;;  %v613_v15 = vld [vmem:[#allocation7 + $0x20] sm:$0xff]   ;;  %v614_v17 = vld [vmem:[#allocation7 + $0x28] sm:$0xff]   ;;  %v605_v18 = vld [vmem:[#allocation5 + $0x48] sm:$0xff]  }
  0x50   :  { %188 = vmatpush1.bf16.msra.mxu0 %v597_v3  ;;  %v606_v19 = vld [vmem:[#allocation2] ss:$8 sps:$4 sm:$0xff]   ;;  %v615_v20 = vld [vmem:[#allocation7 + $0x30] sm:$0xff]   ;;  %v616_v21 = vld [vmem:[#allocation7 + $0x38] sm:$0xff]  }
  0x51   :  { %189 = vmatprep.subr.bf16.mxu0 %v751_v0  ;;  %v485_v22 = vld [vmem:[%s905_s2] ss:$0 sm:$0xff]  ;;  %v618_v33 = vld [vmem:[#allocation8 + $0x8] sm:$0xff]   ;;  %v619_v34 = vld [vmem:[#allocation8 + $0x10] sm:$0xff]  }
  0x52   :  { %547 = vmatpush3.bf16.msra.mxu1 %v610_v9  ;;  %v617_v31 = vld [vmem:[#allocation8] sm:$0xff]   ;;  %v620_v35 = vld [vmem:[#allocation8 + $0x18] sm:$0xff]   ;;  %v622_v37 = vld [vmem:[#allocation8 + $0x28] sm:$0xff]  }
  0x53   :  { %548 = vmatprep.subr.bf16.mxu1 %v752_v1  ;;  %v621_v36 = vld [vmem:[#allocation8 + $0x20] sm:$0xff]   ;;  %v623_v38 = vld [vmem:[#allocation8 + $0x30] sm:$0xff]   ;;  %v624_v39 = vld [vmem:[#allocation8 + $0x38] sm:$0xff]  }
  0x54   :  { %190 = vmatpush1.bf16.msra.mxu0 %v598_v4  ;;  %v499_v40 = vld [vmem:[%s907_s4] ss:$0 sm:$0xff]  ;;  %s713_s4 = scalar_lea.vmem %s472_s10, 128 }
  0x55   :  { %191 = vmatprep.subr.bf16.mxu0 %v751_v0  ;;  %v508_v50 = vld [vmem:[%s909_s6] ss:$0 sm:$0xff]  ;;  %p714_p4 = scmp.ne.s32.totalorder %s472_s10, %s713_s4  ;;  %p719_p6 = scmp.lt.s32.totalorder %s713_s4, %s713_s4 }
  0x56   :  { %549 = vmatpush3.bf16.msra.mxu1 %v611_v11 }
  0x57   :  { %550 = vmatprep.subr.bf16.mxu1 %v752_v1  ;;  %p720_p7 = por %p719_p6, %p718_p5 }
  0x58   :  { %192 = vmatpush1.bf16.msra.mxu0 %v599_v5 }
  0x59   :  { %193 = vmatprep.subr.bf16.mxu0 %v751_v0  ;;  %p721_p8 = pnand %p720_p7, %p714_p4 }
  0x5a   :  { %551 = vmatpush3.bf16.msra.mxu1 %v612_v13 }
  0x5b   :  { %552 = vmatprep.subr.bf16.mxu1 %v752_v1 }
  0x5c   :  { %194 = vmatpush1.bf16.msra.mxu0 %v600_v8 }
  0x5d   :  { %195 = vmatprep.subr.bf16.mxu0 %v751_v0 }
  0x5e   :  { %553 = vmatpush3.bf16.msra.mxu1 %v613_v15 }
  0x5f   :  { %554 = vmatprep.subr.bf16.mxu1 %v752_v1 }
  0x60   :  { %196 = vmatpush1.bf16.msra.mxu0 %v601_v10 }
  0x61   :  { %197 = vmatprep.subr.bf16.mxu0 %v751_v0 }
  0x62   :  { %555 = vmatpush3.bf16.msra.mxu1 %v614_v17 }
  0x63   :  { %556 = vmatprep.subr.bf16.mxu1 %v752_v1 }
  0x64   :  { %198 = vmatpush1.bf16.msra.mxu0 %v602_v12 }
  0x65   :  { %199 = vmatprep.subr.bf16.mxu0 %v751_v0 }
  0x66   :  { %557 = vmatpush3.bf16.msra.mxu1 %v615_v20 }
  0x67   :  { %558 = vmatprep.subr.bf16.mxu1 %v752_v1 }
  0x68   :  { %200 = vmatpush1.bf16.msra.mxu0 %v603_v14 }
  0x69   :  { %201 = vmatprep.subr.bf16.mxu0 %v751_v0 }
  0x6a   :  { %559 = vmatpush3.bf16.msra.mxu1 %v616_v21 }
  0x6b   :  { %564 = vmatprep.subr.bf16.mxu1 %v752_v1 }
  0x6c   :  { %202 = vmatpush1.bf16.msra.mxu0 %v604_v16 }
  0x6d   :  { %203 = vmatprep.subr.bf16.mxu0 %v751_v0 }
  0x70   :  { %204 = vmatpush1.bf16.msra.mxu0 %v605_v18 }
  0x73   :  { %218 = vmatmul.mubr.bf16.vlgmr.msra.gmra.mrb[0].mxu0 %v606_v19 }
 0x146   :  { %v219_v23 = vpop.f32.mrb[0].mxu0 }
 0x147   :  { %v220_v24 = vadd.f32 %v485_v22, %v219_v23  ;;  %v221_v25 = vpop.f32.mrb[1].mxu0 }
 0x148   :  { %v222_v26 = vpop.f32.mrb[2].mxu0 }
 0x149   :  { %v223_v27 = vadd.f32 %v485_v22, %v222_v26  ;;  %v224_v28 = vpop.f32.mrb[3].mxu0  ;;  %v226_v29 = vmax.f32 %v220_v24, 0.0 }
 0x14b   :  { %v227_v30 = vmax.f32 %v223_v27, 0.0 }
 0x14d   :  { %v228_v32 = vpack.c.bf16 %v227_v30, %v226_v29 }
 0x14f   :  { %561 = vmatmul.mubr.bf16.vlgmr.msra.gmra.mrb[0].mxu1 %v228_v32 }
 0x150   :  { %565 = vmatpush3.bf16.msra.mxu1 %v617_v31  ;;  %580 = vmatprep.mubr.msk.bf16.mxu1 %vm753_vm1, %v752_v1 }
 0x151   :  { %566 = vmatprep.subr.bf16.mxu1 %v752_v1 }
 0x154   :  { %567 = vmatpush3.bf16.msra.mxu1 %v618_v33 }
 0x155   :  { %568 = vmatprep.subr.bf16.mxu1 %v752_v1 }
 0x158   :  { %569 = vmatpush3.bf16.msra.mxu1 %v619_v34 }
 0x159   :  { %570 = vmatprep.subr.bf16.mxu1 %v752_v1 }
 0x15c   :  { %571 = vmatpush3.bf16.msra.mxu1 %v620_v35 }
 0x15d   :  { %572 = vmatprep.subr.bf16.mxu1 %v752_v1 }
 0x160   :  { %573 = vmatpush3.bf16.msra.mxu1 %v621_v36 }
 0x161   :  { %574 = vmatprep.subr.bf16.mxu1 %v752_v1 }
 0x164   :  { %575 = vmatpush3.bf16.msra.mxu1 %v622_v37 }
 0x165   :  { %576 = vmatprep.subr.bf16.mxu1 %v752_v1 }
 0x168   :  { %577 = vmatpush3.bf16.msra.mxu1 %v623_v38 }
 0x169   :  { %578 = vmatprep.subr.bf16.mxu1 %v752_v1 }
 0x16c   :  { %579 = vmatpush3.bf16.msra.mxu1 %v624_v39 }
 0x222   :  { %v334_v41 = vpop.f32.mrb[0].mxu1 }
 0x223   :  { %v335_v42 = vadd.f32 %v499_v40, %v334_v41  ;;  %v562_v43 = vpop.f32.mrb[1].mxu1 }
 0x224   :  { %v337_v44 = vpop.f32.mrb[2].mxu1 }
 0x225   :  { %v338_v45 = vadd.f32 %v499_v40, %v337_v44  ;;  %v563_v46 = vpop.f32.mrb[3].mxu1  ;;  %v341_v47 = vmax.f32 %v335_v42, 0.0 }
 0x227   :  { %v342_v48 = vmax.f32 %v338_v45, 0.0 }
 0x229   :  { %v343_v49 = vpack.c.bf16 %v342_v48, %v341_v47 }
 0x22b   :  { %581 = vmatmul.mubr.bf16.vlgmr.msra.gmra.mrb[4].mxu1 %v343_v49 }
 0x2fe   :  { %v449_v51 = vpop.f32.mrb[4].mxu1 }
 0x2ff   :  { %v582_v52 = vpop.f32.mrb[5].mxu1  ;;  %v450_v54 = vadd.f32 %v508_v50, %v449_v51 }
 0x300   :  { %v452_v53 = vpop.f32.mrb[6].mxu1 }
 0x301   :  { %v453_v55 = vadd.f32 %v508_v50, %v452_v53  ;;  %v583_v56 = vpop.f32.mrb[7].mxu1 }
 0x303   :  { %v524_v57 = vpack.c.bf16 %v453_v55, %v450_v54 }
 0x305   :  { %525 = vst [vmem:[#allocation10] sm:$0xff] %v524_v57  }
 0x306   :  { %724 = shalt.err (!%p721_p8)
}
 0x307   :  { %s725_s14 = scalar_lea.hbm %s910_s7, 128 }
 0x308   :  { %p726_p9 = scmp.ne.s32.totalorder %s910_s7, %s725_s14  ;;  %p729_p10 = scmp.lt.u32.totalorder %s725_s14, %s910_s7 }
 0x30a   :  { %p731_p11 = pnand %p729_p10, %p726_p9 }
 0x30c   :  { %734 = shalt.err (!%p731_p11)
}
 0x30d   :  { %477 = dma.vmem_to_hbm [thread:$0]  %s472_s10, 128, %s910_s7, [#allocation4], %s744_s11, %s744_s11, %s745_s12  }
 0x30e   :  { %741 = dma.done.wait [#allocation4], 128  }
 0x30f   :  { %742 = vsyncadd [#allocation4], 4294967168 }
 0x310   :  { %481 = vsyncpa [#allocation3], 1 }
 0x311   :  { %482 = vsyncpa [#allocation6], 1 }
 0x312   :  { %483 = vsyncpa [#allocation9], 1 }
 0x313   :  { %484 = vsyncpa [#allocation4], 1 }

</bundles_post_ra>
